<compile_context>
chip_gen: v5e
topology: v5e:2x2
jax: 0.10.0
libtpu: 0.0.40
codegen_flags: <defaults>
</compile_context>

<pallas_src>
import functools
import math

import jax
import jax.numpy as jnp
from jax.experimental import pallas as pl
from jax.experimental.pallas import tpu as pltpu

LEAKY_SLOPE = 0.01               # nn.LeakyReLU() default
BN_EPS = 1e-5
BN_SCALE = 1.0 / math.sqrt(1.0 + BN_EPS)   # fresh BN (gamma=1, beta=0, mean=0, var=1), eval mode


def _vmem_limit_bytes():
    """Generation-aware scoped-VMEM budget (v7x: 64 MiB physical -> ~48 MiB)."""
    try:
        cap = int(pltpu.get_tpu_info().vmem_capacity_bytes)
    except Exception:
        cap = 64 * 1024 * 1024
    return max(32 * 1024 * 1024, min(cap - 16 * 1024 * 1024, 100 * 1024 * 1024))


VMEM_LIMIT = _vmem_limit_bytes()


def _act(x, act):
    if act == "none":
        return x
    if act == "relu":
        return jnp.maximum(x, 0.0)
    if act == "leaky":
        return jnp.where(x > 0, x, LEAKY_SLOPE * x)
    raise ValueError(act)


# ----------------------------------------------------------------------------------
# Pallas kernels
# ----------------------------------------------------------------------------------
def conv_row_kernel(*refs, kh, kw, dil, ow, act, has_res):
    """One output row per (n, oy) grid point; grid axis 2 runs over the kh row taps.

    refs: x, w, scale, bias, [residual], out, acc_scratch
      x   : (1, 1, Wp, Cin)   one padded input row (selected by the index_map)
      w   : (kh, kw, Cin, Cout)  full weight, VMEM-resident (constant index_map)
      out : (1, 1, ow, Cout)
      acc : (ow, Cout) f32 VMEM scratch
    """
    if has_res:
        x_ref, w_ref, s_ref, b_ref, r_ref, o_ref, acc_ref = refs
    else:
        x_ref, w_ref, s_ref, b_ref, o_ref, acc_ref = refs
        r_ref = None

    ki = pl.program_id(2)

    @pl.when(ki == 0)
    def _init():
        acc_ref[...] = jnp.zeros_like(acc_ref)

    acc = acc_ref[...]
    for j in range(kw):                                   # static, unrolled column taps
        xs = x_ref[0, 0, j * dil:j * dil + ow, :]         # (ow, Cin) bf16, contiguous
        wj = w_ref[ki, j]                                 # (Cin, Cout) bf16
        acc = acc + jnp.dot(xs, wj, preferred_element_type=jnp.float32)
    acc_ref[...] = acc

    @pl.when(ki == kh - 1)
    def _finalize():
        out = acc * s_ref[...] + b_ref[...]               # folded BN / bias
        if r_ref is not None:
            out = out + r_ref[0, 0].astype(jnp.float32)   # fused residual add
        o_ref[0, 0] = _act(out, act).astype(o_ref.dtype)


def sum_act_kernel(*refs, n_in, act):
    o_ref = refs[n_in]
    acc = refs[0][...].astype(jnp.float32)
    for r in refs[1:n_in]:
        acc = acc + r[...].astype(jnp.float32)
    o_ref[...] = _act(acc, act).astype(o_ref.dtype)


# ----------------------------------------------------------------------------------
# Conv wrappers
# ----------------------------------------------------------------------------------
def conv2d_pallas(x, w_hwio, scale, bias, *, stride=1, padding=0, dilation=1,
                  act="none", residual=None, out_dtype=jnp.bfloat16):
    """Direct conv: no im2col, bf16 MXU matmuls, f32 accumulation, fused epilogue."""
    N, H, W, Cin = x.shape
    kh, kw, wcin, Cout = w_hwio.shape
    assert wcin == Cin, (wcin, Cin)
    Hp, Wp = H + 2 * padding, W + 2 * padding
    OH = (Hp - dilation * (kh - 1) - 1) // stride + 1
    ow_full = Wp - dilation * (kw - 1)       # stride-1 column sweep, subsample after
    OW = (ow_full - 1) // stride + 1

    xp = x.astype(jnp.bfloat16)
    if padding > 0:
        xp = jnp.pad(xp, ((0, 0), (padding, padding), (padding, padding), (0, 0)))
    wb = w_hwio.astype(jnp.bfloat16)
    s2 = scale.reshape(1, Cout).astype(jnp.float32)
    b2 = bias.reshape(1, Cout).astype(jnp.float32)

    in_specs = [
        # one padded input row, chosen by (stride * oy + dilation * ki)
        pl.BlockSpec((1, 1, Wp, Cin),
                     lambda n, oy, ki: (n, stride * oy + dilation * ki, 0, 0)),
        # full weight, constant index -> fetched once, resident in VMEM
        pl.BlockSpec((kh, kw, Cin, Cout), lambda n, oy, ki: (0, 0, 0, 0)),
        pl.BlockSpec((1, Cout), lambda n, oy, ki: (0, 0)),
        pl.BlockSpec((1, Cout), lambda n, oy, ki: (0, 0)),
    ]
    args = [xp, wb, s2, b2]
    has_res = residual is not None
    if has_res:
        assert stride == 1 and residual.shape == (N, OH, OW, Cout)
        in_specs.append(pl.BlockSpec((1, 1, OW, Cout), lambda n, oy, ki: (n, oy, 0, 0)))
        args.append(residual.astype(jnp.bfloat16))

    out = pl.pallas_call(
        functools.partial(conv_row_kernel, kh=kh, kw=kw, dil=dilation,
                          ow=ow_full, act=act, has_res=has_res),
        out_shape=jax.ShapeDtypeStruct((N, OH, ow_full, Cout), out_dtype),
        grid=(N, OH, kh),
        in_specs=in_specs,
        out_specs=pl.BlockSpec((1, 1, ow_full, Cout), lambda n, oy, ki: (n, oy, 0, 0)),
        scratch_shapes=[pltpu.VMEM((ow_full, Cout), jnp.float32)],
        compiler_params=pltpu.CompilerParams(
            dimension_semantics=("parallel", "parallel", "arbitrary"),
            vmem_limit_bytes=VMEM_LIMIT,
        ),
    )(*args)

    if stride > 1:
        out = out[:, :, ::stride, :]     # column subsample for the few strided convs
    return out


def fused_add_act(tensors, act="none", out_dtype=jnp.bfloat16):
    """act(sum(tensors)), row-tiled + lane-dense (channels on the lane axis)."""
    shape = tensors[0].shape
    C = shape[-1]
    flat = [t.reshape(-1, C) for t in tensors]
    M = flat[0].shape[0]
    TM = M if M <= 512 else 512
    out = pl.pallas_call(
        functools.partial(sum_act_kernel, n_in=len(flat), act=act),
        out_shape=jax.ShapeDtypeStruct((M, C), out_dtype),
        grid=(pl.cdiv(M, TM),),
        in_specs=[pl.BlockSpec((TM, C), lambda i: (i, 0)) for _ in flat],
        out_specs=pl.BlockSpec((TM, C), lambda i: (i, 0)),
        compiler_params=pltpu.CompilerParams(
            dimension_semantics=("parallel",),
            vmem_limit_bytes=VMEM_LIMIT,
        ),
    )(*flat)
    return out.reshape(shape)


def conv_bn_act(x, p, stride=1, padding=0, dilation=1, act="none",
                use_bn=True, residual=None):
    w = p["w"]
    cin = x.shape[-1]
    if w.shape[2] != cin:
        # TODO(synk): decoder DoubleConv declared in-channels exceed the actual concat
        # width (reference forward is inconsistent); slice the weight to the real input
        # channels instead of zero-padding the activation (same math, no dead FLOPs).
        w = w[:, :, :cin, :]
    cout = w.shape[-1]
    if use_bn:
        # Fresh eval-mode BatchNorm folded into the matmul epilogue.  With trained BN
        # params the per-channel scale/bias would be gamma/sqrt(var+eps) and
        # beta - mean*scale (conv bias folded in) - same code path, different values.
        scale = jnp.full((cout,), BN_SCALE, jnp.float32)
        bias = p["b"].astype(jnp.float32) * BN_SCALE
    else:
        scale = jnp.ones((cout,), jnp.float32)
        bias = p["b"].astype(jnp.float32)
    return conv2d_pallas(x, w, scale, bias, stride=stride, padding=padding,
                         dilation=dilation, act=act, residual=residual)


def conv_transpose2x2(x, p):
    # ConvTranspose2d(kernel=2, stride=2) == 1x1 conv to 4*Cout channels + interleave.
    N, H, W, Cin = x.shape
    Cout = p["w"].shape[-1]
    w = p["w"].reshape(1, 1, Cin, 4 * Cout)        # (Cin, di, dj, Cout) -> 1x1 conv
    bias = jnp.tile(p["b"], 4)
    scale = jnp.ones((4 * Cout,), jnp.float32)
    y = conv2d_pallas(x, w, scale, bias, stride=1, padding=0, act="none")
    y = y.reshape(N, H, W, 2, 2, Cout).transpose(0, 1, 3, 2, 4, 5)
    return y.reshape(N, 2 * H, 2 * W, Cout)


def final_conv(x, p):
    # TODO(synk): num_classes=1 -> a 1-lane Pallas output would be ~100x under-utilized
    # (masked stores, 1/256 MXU columns); this tiny 1x1 conv stays in plain JAX.
    w = p["w"][0, 0].astype(jnp.float32)           # (64, num_classes)
    return jnp.einsum("nhwc,co->nhwo", x.astype(jnp.float32), w) + \
        p["b"].astype(jnp.float32)


# ----------------------------------------------------------------------------------
# Deterministic parameter initialization (shapes follow the module's __init__)
# ----------------------------------------------------------------------------------
class ParamGen:
    def __init__(self, seed=0):
        self.key = jax.random.PRNGKey(seed)

    def normal(self, shape, std):
        self.key, sub = jax.random.split(self.key)
        return std * jax.random.normal(sub, shape, dtype=jnp.float32)


def conv_params(gen, kh, kw, cin, cout, bias=True):
    std = 0.5 * math.sqrt(2.0 / (kh * kw * cin))
    w = gen.normal((kh, kw, cin, cout), std)       # HWIO (permuted PyTorch OIHW)
    b = gen.normal((cout,), 0.01) if bias else jnp.zeros((cout,), jnp.float32)
    return {"w": w, "b": b}


def make_up(gen, cin, cout):
    std = 0.5 * math.sqrt(2.0 / cin)
    return {"w": gen.normal((cin, 2, 2, cout), std), "b": gen.normal((cout,), 0.01)}


def make_basic_block(gen, cin, cout, stride):
    p = {"conv1": conv_params(gen, 3, 3, cin, cout, bias=False),
         "conv2": conv_params(gen, 3, 3, cout, cout, bias=False)}
    if stride != 1 or cin != cout:
        p["down"] = conv_params(gen, 1, 1, cin, cout, bias=False)
    return p


def make_layer(gen, cin, cout, nblocks, stride):
    blocks = [(make_basic_block(gen, cin, cout, stride), stride)]
    for _ in range(nblocks - 1):
        blocks.append((make_basic_block(gen, cout, cout, 1), 1))
    return blocks


def make_dilate_block(gen, c):
    ps = []
    for d in (1, 2, 4, 8):
        p = conv_params(gen, 3, 3, c, c, bias=True)
        p["b"] = jnp.zeros((c,), jnp.float32)      # biases zeroed in Dilate_block.__init__
        ps.append((p, d))
    return ps


def make_double_conv(gen, cin, cout):
    return {"c1": conv_params(gen, 3, 3, cin, cout, bias=True),
            "c2": conv_params(gen, 3, 3, cout, cout, bias=True)}


def init_params(num_classes=1, num_channels=3, seed=0):
    gen = ParamGen(seed)
    filters = [64, 128, 256, 512, 512]
    P = {}
    P["input_conv"] = conv_params(gen, 7, 7, num_channels, filters[0], bias=False)
    P["layer1"] = make_layer(gen, 64, 64, 3, 1)
    P["layer2"] = make_layer(gen, 64, 128, 4, 2)
    P["layer3"] = make_layer(gen, 128, 256, 6, 2)
    P["layer4"] = make_layer(gen, 256, 512, 3, 2)
    P["dblock"] = make_dilate_block(gen, 512)
    P["dc5"] = make_double_conv(gen, filters[4], filters[3])   # 512 -> 512
    P["dc6"] = make_double_conv(gen, filters[3], filters[2])   # 512 -> 256
    P["dc7"] = make_double_conv(gen, filters[2], filters[1])   # 256 -> 128
    P["dc8"] = make_double_conv(gen, filters[1], filters[0])   # 128 -> 64
    P["up1"] = make_up(gen, filters[4], filters[4] // 2)
    P["up2"] = make_up(gen, filters[3], filters[3] // 2)
    P["up3"] = make_up(gen, filters[2], filters[2] // 2)
    P["up4"] = make_up(gen, filters[1], filters[1] // 2)
    P["out"] = conv_params(gen, 1, 1, filters[0], num_classes, bias=True)
    return P


# ----------------------------------------------------------------------------------
# Network blocks
# ----------------------------------------------------------------------------------
def basic_block(x, p, stride):
    out = conv_bn_act(x, p["conv1"], stride=stride, padding=1, act="relu")
    if "down" in p:
        identity = conv_bn_act(x, p["down"], stride=stride, padding=0, act="none")
    else:
        identity = x
    # residual add + final ReLU fused into conv2's epilogue (saves a full HBM pass)
    return conv_bn_act(out, p["conv2"], stride=1, padding=1, act="relu",
                       residual=identity)


def run_layer(x, blocks):
    for p, s in blocks:
        x = basic_block(x, p, s)
    return x


def dilate_block(x, ps):
    outs = [x]
    cur = x
    for p, d in ps:
        cur = conv_bn_act(cur, p, stride=1, padding=d, dilation=d,
                          act="leaky", use_bn=False)
        outs.append(cur)
    return fused_add_act(outs, act="none")


def double_conv(x, p):
    x = conv_bn_act(x, p["c1"], stride=1, padding=1, act="leaky", use_bn=True)
    x = conv_bn_act(x, p["c2"], stride=1, padding=1, act="leaky", use_bn=True)
    return x


def res_unet34_forward(x_nchw, P):
    x = jnp.transpose(x_nchw, (0, 2, 3, 1))        # NCHW -> NHWC (channels on lanes)
    # inputs: Conv(7x7, s2, p3, no bias) + BN + ReLU   (no maxpool, as in the module)
    x = conv_bn_act(x, P["input_conv"], stride=2, padding=3, act="relu", use_bn=True)
    e1 = run_layer(x, P["layer1"])     # 64  @ H/2
    e2 = run_layer(e1, P["layer2"])    # 128 @ H/4
    e3 = run_layer(e2, P["layer3"])    # 256 @ H/8
    e4 = run_layer(e3, P["layer4"])    # 512 @ H/16
    e4 = dilate_block(e4, P["dblock"])

    # TODO(synk): the reference forward cats tensors at different resolutions
    # (e.g. cat([e4 @H/16, up1(e4) @H/8])) and with channel counts that do not match
    # the DoubleConv in-channels; it cannot run in PyTorch.  Here the spatially
    # consistent skip (one encoder level up) is used, and the DoubleConv first-conv
    # weights are sliced to the actual concat width (see conv_bn_act) so that every
    # parameter shape from __init__ is preserved.
    x = conv_transpose2x2(e4, P["up1"])                           # 256 @ H/8
    x = double_conv(jnp.concatenate([e3, x], -1), P["dc5"])       # 512 in
    x = conv_transpose2x2(x, P["up2"])                            # 256 @ H/4
    x = double_conv(jnp.concatenate([e2, x], -1), P["dc6"])       # 384 in (w sliced)
    x = conv_transpose2x2(x, P["up3"])                            # 128 @ H/2
    x = double_conv(jnp.concatenate([e1, x], -1), P["dc7"])       # 192 in (w sliced)
    x = conv_transpose2x2(x, P["up4"])                            # 64  @ H
    x = double_conv(x, P["dc8"])                                  # 64 in (w sliced)
    # TODO(synk): reference applies self.out twice (64->num_classes, then again
    # expecting 64 input channels) - a channel-count bug; applied once here.
    x = final_conv(x, P["out"])
    return jnp.transpose(x, (0, 3, 1, 2)).astype(jnp.float32)     # back to NCHW


# ----------------------------------------------------------------------------------
if __name__ == "__main__":
    key = jax.random.PRNGKey(0)
    x = jax.random.normal(key, (2, 3, 16, 16), dtype=jnp.float32)   # NCHW like PyTorch
    params = init_params(num_classes=1, num_channels=3, seed=0)
    y = res_unet34_forward(x, params)
    y = jax.block_until_ready(y)
    assert y.shape == (2, 1, 16, 16), y.shape
    assert bool(jnp.all(jnp.isfinite(y)))
    print("KERNEL_OK")
</pallas_src>

<mosaic_0001>
module attributes {stable_mosaic.version = 11 : i64} {
  func.func @conv_row_kernel(%arg0: i32, %arg1: i32, %arg2: i32, %arg3: memref<1x1x22x3xbf16, #tpu.memory_space<vmem>>, %arg4: memref<7x7x3x64xbf16, #tpu.memory_space<vmem>>, %arg5: memref<1x64xf32, #tpu.memory_space<vmem>>, %arg6: memref<1x64xf32, #tpu.memory_space<vmem>>, %arg7: memref<1x1x16x64xbf16, #tpu.memory_space<vmem>>, %arg8: memref<16x64xf32, #tpu.memory_space<vmem>>) attributes {dimension_semantics = [#tpu.dimension_semantics<parallel>, #tpu.dimension_semantics<parallel>, #tpu.dimension_semantics<arbitrary>], iteration_bounds = array<i64: 2, 8, 7>, scalar_prefetch = 0 : i64, scratch_operands = 1 : i64, tpu.core_type = #tpu.core_type<tc>, window_params = [{transform_indices = @transform_0, window_bounds = array<i64: 1, 1, 22, 3>}, {pipeline_mode = #tpu.pipeline_mode<synchronous>, transform_indices = @transform_1, window_bounds = array<i64: 7, 7, 3, 64>}, {pipeline_mode = #tpu.pipeline_mode<synchronous>, transform_indices = @transform_2, window_bounds = array<i64: 1, 64>}, {pipeline_mode = #tpu.pipeline_mode<synchronous>, transform_indices = @transform_3, window_bounds = array<i64: 1, 64>}, {transform_indices = @transform_4, window_bounds = array<i64: 1, 1, 16, 64>}]} {
    %c0_i32 = arith.constant 0 : i32
    %0 = arith.cmpi eq, %arg2, %c0_i32 : i32
    %1 = arith.extui %0 : i1 to i32
    %c0_i32_0 = arith.constant 0 : i32
    %2 = arith.cmpi ne, %1, %c0_i32_0 : i32
    scf.if %2 {
      %cst_54 = arith.constant 0.000000e+00 : f32
      %57 = vector.broadcast %cst_54 : f32 to vector<16x64xf32>
      %c0_55 = arith.constant 0 : index
      %c0_56 = arith.constant 0 : index
      %58 = vector.load %arg8[%c0_55, %c0_56] : memref<16x64xf32, #tpu.memory_space<vmem>>, vector<16x64xf32>
      tpu.vector_store %arg8[%c0_55, %c0_56], %57 {strides = array<i32>} : memref<16x64xf32, #tpu.memory_space<vmem>>, vector<16x64xf32>,
    } else {
    }
    %c0 = arith.constant 0 : index
    %c0_1 = arith.constant 0 : index
    %3 = vector.load %arg8[%c0, %c0_1] : memref<16x64xf32, #tpu.memory_space<vmem>>, vector<16x64xf32>
    %c0_2 = arith.constant 0 : index
    %c0_3 = arith.constant 0 : index
    %c0_4 = arith.constant 0 : index
    %c0_5 = arith.constant 0 : index
    %4 = vector.load %arg3[%c0_2, %c0_3, %c0_4, %c0_5] : memref<1x1x22x3xbf16, #tpu.memory_space<vmem>>, vector<1x1x16x3xbf16>
    %5 = vector.shape_cast %4 : vector<1x1x16x3xbf16> to vector<16x3xbf16>
    %6 = arith.index_cast %arg2 : i32 to index
    %c0_6 = arith.constant 0 : index
    %c0_7 = arith.constant 0 : index
    %c0_8 = arith.constant 0 : index
    %7 = vector.load %arg4[%6, %c0_6, %c0_7, %c0_8] : memref<7x7x3x64xbf16, #tpu.memory_space<vmem>>, vector<1x1x3x64xbf16>
    %8 = vector.shape_cast %7 : vector<1x1x3x64xbf16> to vector<3x64xbf16>
    %cst = arith.constant dense<0.000000e+00> : vector<16x64xf32>
    %9 = tpu.matmul %5, %8, %cst {dimension_numbers = #tpu.dot_dimension_numbers<[1], [0], [0], [1], [0, 0, 1, 1], [], []>} : vector<16x3xbf16>, vector<3x64xbf16>, vector<16x64xf32> -> vector<16x64xf32>
    %10 = arith.addf %3, %9 : vector<16x64xf32>
    %c0_9 = arith.constant 0 : index
    %c0_10 = arith.constant 0 : index
    %c1 = arith.constant 1 : index
    %c0_11 = arith.constant 0 : index
    %11 = vector.load %arg3[%c0_9, %c0_10, %c1, %c0_11] : memref<1x1x22x3xbf16, #tpu.memory_space<vmem>>, vector<1x1x16x3xbf16>
    %12 = vector.shape_cast %11 : vector<1x1x16x3xbf16> to vector<16x3xbf16>
    %13 = arith.index_cast %arg2 : i32 to index
    %c1_12 = arith.constant 1 : index
    %c0_13 = arith.constant 0 : index
    %c0_14 = arith.constant 0 : index
    %14 = vector.load %arg4[%13, %c1_12, %c0_13, %c0_14] : memref<7x7x3x64xbf16, #tpu.memory_space<vmem>>, vector<1x1x3x64xbf16>
    %15 = vector.shape_cast %14 : vector<1x1x3x64xbf16> to vector<3x64xbf16>
    %cst_15 = arith.constant dense<0.000000e+00> : vector<16x64xf32>
    %16 = tpu.matmul %12, %15, %cst_15 {dimension_numbers = #tpu.dot_dimension_numbers<[1], [0], [0], [1], [0, 0, 1, 1], [], []>} : vector<16x3xbf16>, vector<3x64xbf16>, vector<16x64xf32> -> vector<16x64xf32>
    %17 = arith.addf %10, %16 : vector<16x64xf32>
    %c0_16 = arith.constant 0 : index
    %c0_17 = arith.constant 0 : index
    %c2 = arith.constant 2 : index
    %c0_18 = arith.constant 0 : index
    %18 = vector.load %arg3[%c0_16, %c0_17, %c2, %c0_18] : memref<1x1x22x3xbf16, #tpu.memory_space<vmem>>, vector<1x1x16x3xbf16>
    %19 = vector.shape_cast %18 : vector<1x1x16x3xbf16> to vector<16x3xbf16>
    %20 = arith.index_cast %arg2 : i32 to index
    %c2_19 = arith.constant 2 : index
    %c0_20 = arith.constant 0 : index
    %c0_21 = arith.constant 0 : index
    %21 = vector.load %arg4[%20, %c2_19, %c0_20, %c0_21] : memref<7x7x3x64xbf16, #tpu.memory_space<vmem>>, vector<1x1x3x64xbf16>
    %22 = vector.shape_cast %21 : vector<1x1x3x64xbf16> to vector<3x64xbf16>
    %cst_22 = arith.constant dense<0.000000e+00> : vector<16x64xf32>
    %23 = tpu.matmul %19, %22, %cst_22 {dimension_numbers = #tpu.dot_dimension_numbers<[1], [0], [0], [1], [0, 0, 1, 1], [], []>} : vector<16x3xbf16>, vector<3x64xbf16>, vector<16x64xf32> -> vector<16x64xf32>
    %24 = arith.addf %17, %23 : vector<16x64xf32>
    %c0_23 = arith.constant 0 : index
    %c0_24 = arith.constant 0 : index
    %c3 = arith.constant 3 : index
    %c0_25 = arith.constant 0 : index
    %25 = vector.load %arg3[%c0_23, %c0_24, %c3, %c0_25] : memref<1x1x22x3xbf16, #tpu.memory_space<vmem>>, vector<1x1x16x3xbf16>
    %26 = vector.shape_cast %25 : vector<1x1x16x3xbf16> to vector<16x3xbf16>
    %27 = arith.index_cast %arg2 : i32 to index
    %c3_26 = arith.constant 3 : index
    %c0_27 = arith.constant 0 : index
    %c0_28 = arith.constant 0 : index
    %28 = vector.load %arg4[%27, %c3_26, %c0_27, %c0_28] : memref<7x7x3x64xbf16, #tpu.memory_space<vmem>>, vector<1x1x3x64xbf16>
    %29 = vector.shape_cast %28 : vector<1x1x3x64xbf16> to vector<3x64xbf16>
    %cst_29 = arith.constant dense<0.000000e+00> : vector<16x64xf32>
    %30 = tpu.matmul %26, %29, %cst_29 {dimension_numbers = #tpu.dot_dimension_numbers<[1], [0], [0], [1], [0, 0, 1, 1], [], []>} : vector<16x3xbf16>, vector<3x64xbf16>, vector<16x64xf32> -> vector<16x64xf32>
    %31 = arith.addf %24, %30 : vector<16x64xf32>
    %c0_30 = arith.constant 0 : index
    %c0_31 = arith.constant 0 : index
    %c4 = arith.constant 4 : index
    %c0_32 = arith.constant 0 : index
    %32 = vector.load %arg3[%c0_30, %c0_31, %c4, %c0_32] : memref<1x1x22x3xbf16, #tpu.memory_space<vmem>>, vector<1x1x16x3xbf16>
    %33 = vector.shape_cast %32 : vector<1x1x16x3xbf16> to vector<16x3xbf16>
    %34 = arith.index_cast %arg2 : i32 to index
    %c4_33 = arith.constant 4 : index
    %c0_34 = arith.constant 0 : index
    %c0_35 = arith.constant 0 : index
    %35 = vector.load %arg4[%34, %c4_33, %c0_34, %c0_35] : memref<7x7x3x64xbf16, #tpu.memory_space<vmem>>, vector<1x1x3x64xbf16>
    %36 = vector.shape_cast %35 : vector<1x1x3x64xbf16> to vector<3x64xbf16>
    %cst_36 = arith.constant dense<0.000000e+00> : vector<16x64xf32>
    %37 = tpu.matmul %33, %36, %cst_36 {dimension_numbers = #tpu.dot_dimension_numbers<[1], [0], [0], [1], [0, 0, 1, 1], [], []>} : vector<16x3xbf16>, vector<3x64xbf16>, vector<16x64xf32> -> vector<16x64xf32>
    %38 = arith.addf %31, %37 : vector<16x64xf32>
    %c0_37 = arith.constant 0 : index
    %c0_38 = arith.constant 0 : index
    %c5 = arith.constant 5 : index
    %c0_39 = arith.constant 0 : index
    %39 = vector.load %arg3[%c0_37, %c0_38, %c5, %c0_39] : memref<1x1x22x3xbf16, #tpu.memory_space<vmem>>, vector<1x1x16x3xbf16>
    %40 = vector.shape_cast %39 : vector<1x1x16x3xbf16> to vector<16x3xbf16>
    %41 = arith.index_cast %arg2 : i32 to index
    %c5_40 = arith.constant 5 : index
    %c0_41 = arith.constant 0 : index
    %c0_42 = arith.constant 0 : index
    %42 = vector.load %arg4[%41, %c5_40, %c0_41, %c0_42] : memref<7x7x3x64xbf16, #tpu.memory_space<vmem>>, vector<1x1x3x64xbf16>
    %43 = vector.shape_cast %42 : vector<1x1x3x64xbf16> to vector<3x64xbf16>
    %cst_43 = arith.constant dense<0.000000e+00> : vector<16x64xf32>
    %44 = tpu.matmul %40, %43, %cst_43 {dimension_numbers = #tpu.dot_dimension_numbers<[1], [0], [0], [1], [0, 0, 1, 1], [], []>} : vector<16x3xbf16>, vector<3x64xbf16>, vector<16x64xf32> -> vector<16x64xf32>
    %45 = arith.addf %38, %44 : vector<16x64xf32>
    %c0_44 = arith.constant 0 : index
    %c0_45 = arith.constant 0 : index
    %c6 = arith.constant 6 : index
    %c0_46 = arith.constant 0 : index
    %46 = vector.load %arg3[%c0_44, %c0_45, %c6, %c0_46] : memref<1x1x22x3xbf16, #tpu.memory_space<vmem>>, vector<1x1x16x3xbf16>
    %47 = vector.shape_cast %46 : vector<1x1x16x3xbf16> to vector<16x3xbf16>
    %48 = arith.index_cast %arg2 : i32 to index
    %c6_47 = arith.constant 6 : index
    %c0_48 = arith.constant 0 : index
    %c0_49 = arith.constant 0 : index
    %49 = vector.load %arg4[%48, %c6_47, %c0_48, %c0_49] : memref<7x7x3x64xbf16, #tpu.memory_space<vmem>>, vector<1x1x3x64xbf16>
    %50 = vector.shape_cast %49 : vector<1x1x3x64xbf16> to vector<3x64xbf16>
    %cst_50 = arith.constant dense<0.000000e+00> : vector<16x64xf32>
    %51 = tpu.matmul %47, %50, %cst_50 {dimension_numbers = #tpu.dot_dimension_numbers<[1], [0], [0], [1], [0, 0, 1, 1], [], []>} : vector<16x3xbf16>, vector<3x64xbf16>, vector<16x64xf32> -> vector<16x64xf32>
    %52 = arith.addf %45, %51 : vector<16x64xf32>
    %c0_51 = arith.constant 0 : index
    %c0_52 = arith.constant 0 : index
    %53 = vector.load %arg8[%c0_51, %c0_52] : memref<16x64xf32, #tpu.memory_space<vmem>>, vector<16x64xf32>
    tpu.vector_store %arg8[%c0_51, %c0_52], %52 {strides = array<i32>} : memref<16x64xf32, #tpu.memory_space<vmem>>, vector<16x64xf32>,
    %c6_i32 = arith.constant 6 : i32
    %54 = arith.cmpi eq, %arg2, %c6_i32 : i32
    %55 = arith.extui %54 : i1 to i32
    %c0_i32_53 = arith.constant 0 : i32
    %56 = arith.cmpi ne, %55, %c0_i32_53 : i32
    scf.if %56 {
      %c0_54 = arith.constant 0 : index
      %c0_55 = arith.constant 0 : index
      %57 = vector.load %arg5[%c0_54, %c0_55] : memref<1x64xf32, #tpu.memory_space<vmem>>, vector<1x64xf32>
      %58 = vector.broadcast %57 : vector<1x64xf32> to vector<16x64xf32>
      %59 = arith.mulf %52, %58 : vector<16x64xf32>
      %c0_56 = arith.constant 0 : index
      %c0_57 = arith.constant 0 : index
      %60 = vector.load %arg6[%c0_56, %c0_57] : memref<1x64xf32, #tpu.memory_space<vmem>>, vector<1x64xf32>
      %61 = vector.broadcast %60 : vector<1x64xf32> to vector<16x64xf32>
      %62 = arith.addf %59, %61 : vector<16x64xf32>
      %cst_58 = arith.constant 0.000000e+00 : f32
      %63 = vector.broadcast %cst_58 : f32 to vector<16x64xf32>
      %64 = arith.maximumf %62, %63 : vector<16x64xf32>
      %65 = arith.truncf %64 : vector<16x64xf32> to vector<16x64xbf16>
      %c0_59 = arith.constant 0 : index
      %c0_60 = arith.constant 0 : index
      %c0_61 = arith.constant 0 : index
      %c0_62 = arith.constant 0 : index
      %66 = vector.load %arg7[%c0_59, %c0_60, %c0_61, %c0_62] : memref<1x1x16x64xbf16, #tpu.memory_space<vmem>>, vector<1x1x16x64xbf16>
      %67 = vector.shape_cast %66 : vector<1x1x16x64xbf16> to vector<16x64xbf16>
      %68 = vector.shape_cast %65 : vector<16x64xbf16> to vector<1x1x16x64xbf16>
      tpu.vector_store %arg7[%c0_59, %c0_60, %c0_61, %c0_62], %68 {strides = array<i32>} : memref<1x1x16x64xbf16, #tpu.memory_space<vmem>>, vector<1x1x16x64xbf16>,
    } else {
    }
    return
  }
  func.func @transform_0(%arg0: i32, %arg1: i32, %arg2: i32) -> (i32, i32, i32, i32) {
    %c2_i32 = arith.constant 2 : i32
    %0 = arith.muli %c2_i32, %arg1 : i32
    %c1_i32 = arith.constant 1 : i32
    %1 = arith.muli %c1_i32, %arg2 : i32
    %2 = arith.addi %0, %1 : i32
    %c0_i32 = arith.constant 0 : i32
    %c0_i32_0 = arith.constant 0 : i32
    %c0_i32_1 = arith.constant 0 : i32
    return %arg0, %2, %c0_i32, %c0_i32_0 : i32, i32, i32, i32
  }
  func.func @transform_1(%arg0: i32, %arg1: i32, %arg2: i32) -> (i32, i32, i32, i32) {
    %c0_i32 = arith.constant 0 : i32
    %c0_i32_0 = arith.constant 0 : i32
    %c0_i32_1 = arith.constant 0 : i32
    %c0_i32_2 = arith.constant 0 : i32
    %c0_i32_3 = arith.constant 0 : i32
    return %c0_i32, %c0_i32_0, %c0_i32_1, %c0_i32_2 : i32, i32, i32, i32
  }
  func.func @transform_2(%arg0: i32, %arg1: i32, %arg2: i32) -> (i32, i32) {
    %c0_i32 = arith.constant 0 : i32
    %c0_i32_0 = arith.constant 0 : i32
    %c0_i32_1 = arith.constant 0 : i32
    return %c0_i32, %c0_i32_0 : i32, i32
  }
  func.func @transform_3(%arg0: i32, %arg1: i32, %arg2: i32) -> (i32, i32) {
    %c0_i32 = arith.constant 0 : i32
    %c0_i32_0 = arith.constant 0 : i32
    %c0_i32_1 = arith.constant 0 : i32
    return %c0_i32, %c0_i32_0 : i32, i32
  }
  func.func @transform_4(%arg0: i32, %arg1: i32, %arg2: i32) -> (i32, i32, i32, i32) {
    %c0_i32 = arith.constant 0 : i32
    %c0_i32_0 = arith.constant 0 : i32
    %c0_i32_1 = arith.constant 0 : i32
    return %arg0, %arg1, %c0_i32, %c0_i32_0 : i32, i32, i32, i32
  }
}

</mosaic_0001>

<bundles_post_ra>
// kernel: tpu_custom_call.1
= control target key start
LH: loop header
LB: loop body
LE: loop exit
PB: predicated region body
PF: predicated region fallthrough
CT: control target
= control target key end

     0   :  { %9 = vsyncpa [#allocation4], 0  ;;  %s1185_s0 = inlined_call_operand.vmem [shape: bf16[2,22,22,3], index: 0, kind: input, shape index: {}]   ;;  %s1186_s1 = inlined_call_operand.vmem [shape: bf16[7,7,3,64], index: 1, kind: input, shape index: {}]   ;;  %s1187_s2 = inlined_call_operand.vmem [shape: f32[1,64], index: 2, kind: input, shape index: {}]   ;;  %s1188_s3 = inlined_call_operand.vmem [shape: f32[1,64], index: 3, kind: input, shape index: {}]   ;;  %s1189_s4 = inlined_call_operand.hbm [shape: bf16[2,8,16,64], index: 4, kind: output, shape index: {}]  }
   0x1   :  { %11 = vsyncpa [#allocation4 + $0x1], 0  ;;  %s986_s15 = smov 0   ;;  %s988_s16 = smov 0  }
   0x2   :  { %s990_s17 = smov 0   ;;  %s992_s18 = smov 0  }
   0x3   :  { %s994_s19 = smov 0   ;;  %s996_s20 = smov 0  }
   0x4   :  { %s998_s21 = smov 0   ;;  %s1000_s22 = smov 0  }
   0x5   :  { %s1002_s23 = smov 0   ;;  %s1004_s24 = smov 0  }
   0x6 LB: > { %s702_s25 = sadd.s32 4294967295, %s955_s24   ;;  %s703_s26 = sadd.s32 4294967294, %s955_s24   ;;  %s955_s24 = sphi %s1004_s24, %s17_s24   ;;  %s951_s23 = sphi %s1002_s23, %s1208_s23   ;;  %s947_s22 = sphi %s1000_s22, %s1207_s22   ;;  %s943_s21 = sphi %s998_s21, %s1206_s21   ;;  %s939_s20 = sphi %s996_s20, %s1205_s20   ;;  %s935_s19 = sphi %s994_s19, %s1204_s19   ;;  %s931_s18 = sphi %s992_s18, %s1203_s18   ;;  %s927_s17 = sphi %s990_s17, %s1202_s17   ;;  %s923_s16 = sphi %s988_s16, %s1201_s16   ;;  %s919_s15 = sphi %s986_s15, %s1200_s15  }
   0x7   : > { %s29_s27 = sadd.s32 1, %s943_s21  ;;  %s32_s28 = sadd.s32 1, %s947_s22 }
   0x8   : > { %p30_p0 = scmp.ge.s32.totalorder %s29_s27, 7  ;;  %s36_s29 = sadd.s32 1, %s951_s23 }
   0x9   : > { %p150_p1 = scmp.ne.s32.totalorder %s927_s17, %s923_s16  ;;  %p151_p2 = scmp.eq.s32.totalorder %s702_s25, 111 }
   0xa   : > { %s1210_s27 = smov (%p30_p0, %s29_s27), 0  ;;  %s1212_s28 = smov (!%p30_p0, %s32_s28), %s947_s22 }
   0xb   : > { %1192 = sst [smem:[#allocation6_spill]] %s1210_s27  ;;  %p156_p3 = scmp.ne.s32.totalorder %s923_s16, %s919_s15 }
   0xc   : > { %p34_p4 = scmp.ge.s32.totalorder %s1212_s28, 8  ;;  %p157_p5 = scmp.eq.s32.totalorder %s703_s26, 111 }
   0xd   : > { %p1048_p6 = por %p151_p2, %p150_p1  ;;  %p708_p8 = scmp.ge.s32.totalorder %s955_s24, 1 }
   0xe   : > { %s1214_s28 = smov (%p34_p4, %s1212_s28), 0  ;;  %s1216_s29 = smov (!%p34_p4, %s36_s29), %s951_s23 }
   0xf   : > { %1194 = sst [smem:[#allocation7_spill]] %s1214_s28  ;;  %p1055_p7 = por %p157_p5, %p156_p3 }
  0x10   : > { %p38_p9 = scmp.ge.s32.totalorder %s1216_s29, 2  ;;  %p200_p10 = scmp.lt.s32.totalorder %s955_s24, 113 }
  0x11   : > { %s136_s6 = ssub.s32 %s947_s22, %s1214_s28  ;;  %s140_s9 = sadd.s32 1, %s927_s17 }
  0x12   : > { %s1218_s29 = smov (%p38_p9, %s1216_s29), 0  ;;  %p201_p11 = pnand %p708_p8, %p200_p10 }
  0x13   : > { %1196 = sst [smem:[#allocation8_spill]] %s1218_s29  ;;  %s135_s7 = ssub.s32 %s951_s23, %s1218_s29 }
  0x14   : > { %s137_s8 = sor.u32 %s136_s6, %s135_s7  ;;  %204 = sbr.rel (%p201_p11) target bundleno = 237 (0xed), region = 36 }
  0x15   : > { %p138_p12 = scmp.eq.s32.totalorder %s137_s8, 0  ;;  %s229_s11 = sand.u32 (!%p201_p11), 1, %s923_s16  }
  0x16   : > { %s710_s12 = sshll.u32 (!%p201_p11), %s935_s19, 1  ;;  %s709_s13 = sshll.u32 (!%p201_p11), %s229_s11, 3 }
  0x17   : > { %s1069_s10 = scalar_select %p138_p12, %s927_s17, %s140_s9  }
  0x18   : > { %s233_s14 = sadd.s32 (!%p201_p11), %s931_s18, %s710_s12  ;;  %p234_p13 = scmp.lt.s32.totalorder (!%p201_p11), %s939_s20, 1 }
  0x19   : > { %p236_p0 = scmp.lt.s32.totalorder %s233_s14, 21  ;;  %s1085_s27 = scalar_lea.vmem [#allocation3], %s709_s13 }
  0x1a   : > { %s235_s25 = scalar_select %p234_p13, %s939_s20, 1 }
  0x1b   : > { %s1220_s14 = smov (!%p236_p0, %s233_s14), 21  ;;  %p712_p1 = scmp.ne.s32.totalorder %s931_s18, 0 }
  0x1c   : > { %s751_s26 = smul.u32 66, %s235_s25 }
  0x1d   : > { %s750_s6 = smul.u32 3, %s1220_s14 }
  0x1e   : > { %249 = sbr.rel (%p712_p1) target bundleno = 38 (0x26), region = 40 }
  0x1f   : > { %s240_s7 = sadd.s32 %s751_s26, %s750_s6 }
  0x20   : > { %s711_s8 = sshll.u32 %s240_s7, 2 }
  0x21   : > { %s1083_s28 = scalar_lea.vmem %s1185_s0, %s711_s8 }
  0x23   : > { %vm250_vm0 = vcmask 523264   ;;  %v957_v0 = vmov 0.0  }
  0x24   : > { %251 = vst.msk [vmem:[#allocation2] sm:$0xff] %vm250_vm0, %v957_v0 }
  0x25   : > { %252 = vst.msk [vmem:[#allocation2 + $0x8] sm:$0xff] %vm250_vm0, %v957_v0 }
  0x26 PF: > { %s745_s14 = smul.u32 14, %s931_s18  ;;  %vm270_vm1 = vcmask 1040384   ;;  %vm271_vm2 = vcmask 1041408   ;;  %vm266_vm3 = vcmask 23552   ;;  %v958_v1 = vmov 65535   ;;  %v747_v3 = vld [vmem:[%s1083_s28] sm:$0xff]  }
  0x27   : > { %v272_v2 = vsel %vm270_vm1, 4294967295, %v958_v1  ;;  %v295_v4 = vld [vmem:[%s1083_s28 + $0x8] sm:$0x1]  ;;  %v343_v5 = vld [vmem:[%s1083_s28] sm:$0xe]  ;;  %v1097_v7 = vunpack.c.h.b16 %v747_v3  ;;  %vm351_vm4 = vcmask 1046528  }
  0x28   : > { %s1095_s25 = scalar_lea.vmem %s1186_s1, %s745_s14  ;;  %v273_v6 = vsel %vm271_vm2, %v272_v2, 0  ;;  %v305_v8 = vunpack.c.l.b16 %v295_v4  ;;  %v349_v9 = vunpack.c.l.b16 %v343_v5  ;;  %v377_v10 = vld [vmem:[%s1083_s28 + $0x8] sm:$0x3]  ;;  %v425_v11 = vld [vmem:[%s1083_s28] sm:$0xc]  ;;  %v310_v29 = vshrl.u32 %v747_v3, 16 }
  0x29   : > { %v260_v12 = vld [vmem:[%s1095_s25] sm:$0x3]  ;;  %v723_v13 = vld [vmem:[%s1095_s25 + $0x4] sm:$0x3]  ;;  %v720_v14 = vld [vmem:[%s1095_s25 + $0x2] sm:$0x3]  ;;  %v383_v15 = vunpack.c.l.b16 %v377_v10  ;;  %v431_v27 = vunpack.c.l.b16 %v425_v11 }
  0x2a   : > { %v275_v16 = vand.u32 %v273_v6, %v260_v12  ;;  %v359_v17 = vand.u32 %v723_v13, %v273_v6  ;;  %v325_v18 = vand.u32 %v720_v14, %v273_v6  ;;  %v307_v19 = vpack.c.b16 %v305_v8, %v305_v8  ;;  %v726_v20 = vld [vmem:[%s1095_s25 + $0x6] sm:$0x3]  ;;  %v735_v21 = vld [vmem:[%s1095_s25 + $0xc] sm:$0x3]  ;;  %v729_v22 = vld [vmem:[%s1095_s25 + $0x8] sm:$0x3] }
  0x2b   : > { %v744_v23 = vld [vmem:[%s1083_s28] sm:$0xff]  ;;  %v350_v24 = vpack.c.b16 %v1097_v7, %v349_v9  ;;  %v407_v25 = vand.u32 %v726_v20, %v273_v6  ;;  %v523_v26 = vand.u32 %v735_v21, %v273_v6  ;;  %v312_v30 = vshll.u32 %v747_v3, 16  ;;  %v732_v35 = vld [vmem:[%s1095_s25 + $0xa] sm:$0x3]  ;;  %p737_p2 = scmp.ne.s32.totalorder %s931_s18, 6 }
  0x2c   : > { %284 = vmatpush.bf16.msra.mxu0 %v275_v16  ;;  %368 = vmatpush.bf16.msra.mxu2 %v359_v17  ;;  %v353_v28 = vrot.slane %v307_v19, 1  ;;  %v317_v32 = vshll.u32 %v307_v19, 16  ;;  %v441_v33 = vand.u32 %v729_v22, %v273_v6  ;;  %v384_v34 = vpack.c.b16 %v383_v15, %v383_v15  ;;  %v459_v43 = vld [vmem:[%s1083_s28 + $0x8] sm:$0x7]  ;;  %v507_v48 = vld [vmem:[%s1083_s28] sm:$0x8] }
  0x2d   : > { %334 = vmatpush.bf16.msra.mxu1 %v325_v18  ;;  %v352_v31 = vrot.slane %v350_v24, 1  ;;  %416 = vmatpush.bf16.msra.mxu3 %v407_v25  ;;  %vm308_vm5 = vsmask.f32 7424  ;;  %v314_v36 = vrot.slane %v312_v30, 1  ;;  %v387_v37 = vshrl.u32 %v350_v24, 16  ;;  %v253_v14 = vld [vmem:[#allocation2] sm:$0xff] }
  0x2e   : > { %v390_v38 = vshll.u32 %v350_v24, 16  ;;  %v319_v40 = vrot.slane %v317_v32, 1  ;;  %v395_v41 = vshrl.u32 %v384_v34, 16  ;;  %v398_v42 = vshll.u32 %v384_v34, 16  ;;  %v254_v20 = vld [vmem:[#allocation2 + $0x8] sm:$0xff] }
  0x2f   : > { %718 = vmatmul.msk.bf16.vlgmr.msra.gmra.mxu0 %vm266_vm3, %v744_v23  ;;  %v354_v39 = vsel %vm351_vm4, %v352_v31, %v353_v28  ;;  %v315_v44 = vor.u32 %v314_v36, %v310_v29  ;;  %v389_v45 = vrot.slane %v387_v37, 1  ;;  %v489_v47 = vand.u32 %v732_v35, %v273_v6 }
  0x30   : > { %532 = vmatpush.bf16.msrb.mxu2 %v523_v26  ;;  %450 = vmatpush.bf16.msrb.mxu0 %v441_v33  ;;  %v392_v46 = vrot.slane %v390_v38, 2  ;;  %v397_v49 = vrot.slane %v395_v41, 1  ;;  %v400_v50 = vrot.slane %v398_v42, 2  ;;  %v432_v51 = vpack.c.b16 %v1097_v7, %v431_v27 }
  0x31   : > { %724 = vmatmul.msk.bf16.vlgmr.msra.gmra.mxu2 %vm266_vm3, %v354_v39  ;;  %v320_v52 = vsel %vm308_vm5, %v315_v44, %v319_v40  ;;  %vm385_vm6 = vsmask.f32 6400  ;;  %498 = vmatpush.bf16.msrb.mxu1 %v489_v47  ;;  %v465_v54 = vunpack.c.l.b16 %v459_v43  ;;  %v513_v56 = vunpack.c.l.b16 %v507_v48 }
  0x32   : > { %v393_v53 = vor.u32 %v392_v46, %v389_v45  ;;  %721 = vmatmul.msk.bf16.vlgmr.msra.gmra.mxu1 %vm266_vm3, %v320_v52  ;;  %v401_v55 = vor.u32 %v400_v50, %v397_v49  ;;  %v469_v58 = vshrl.u32 %v432_v51, 16  ;;  %v472_v59 = vshll.u32 %v432_v51, 16 }
  0x33   : > { %v466_v57 = vpack.c.b16 %v465_v54, %v465_v54  ;;  %v514_v61 = vpack.c.b16 %v1097_v7, %v513_v56  ;;  %v435_v63 = vrot.slane %v384_v34, 2  ;;  %v434_v1 = vrot.slane %v432_v51, 2 }
  0x34   : > { %v402_v60 = vsel %vm385_vm6, %v393_v53, %v401_v55  ;;  %v471_v2 = vrot.slane %v469_v58, 2  ;;  %v474_v3 = vrot.slane %v472_v59, 3  ;;  %vm433_vm7 = vcmask 1045504  }
  0x35   : > { %727 = vmatmul.msk.bf16.vlgmr.msra.gmra.mxu3 %vm266_vm3, %v402_v60  ;;  %v477_v62 = vshrl.u32 %v466_v57, 16  ;;  %v480_v0 = vshll.u32 %v466_v57, 16  ;;  %v516_v5 = vrot.slane %v514_v61, 3  ;;  %v517_v6 = vrot.slane %v466_v57, 3 }
  0x36   : > { %vm515_vm8 = vcmask 1044480   ;;  %v436_v9 = vsel %vm433_vm7, %v434_v1, %v435_v63  ;;  %v475_v10 = vor.u32 %v474_v3, %v471_v2  ;;  %vm467_vm9 = vsmask.f32 5376 }
  0x37   : > { %v479_v4 = vrot.slane %v477_v62, 2  ;;  %v482_v8 = vrot.slane %v480_v0, 3  ;;  %v518_v12 = vsel %vm515_vm8, %v516_v5, %v517_v6  ;;  %vm541_vm10 = vcmask 523264  }
  0x39   : > { %v483_v11 = vor.u32 %v482_v8, %v479_v4 }
  0x3b   : > { %v484_v7 = vsel %vm467_vm9, %v475_v10, %v483_v11 }
  0x3f   : > { %730 = vmatmul.msk.bf16.vlgmr.msrb.gmra.mxu0 %vm266_vm3, %v436_v9 }
  0x41   : > { %736 = vmatmul.msk.bf16.vlgmr.msrb.gmra.mxu2 %vm266_vm3, %v518_v12 }
  0x42   : > { %733 = vmatmul.msk.bf16.vlgmr.msrb.gmra.mxu1 %vm266_vm3, %v484_v7 }
  0xac   : > { %v286_v13 = vpop.f32.mrf.mxu0 }
  0xad   : > { %v291_v15 = vadd.f32 %v286_v13, %v253_v14 }
  0xaf   : > { %v336_v16 = vpop.f32.mrf.mxu1 }
  0xb0   : > { %v341_v18 = vadd.f32 %v336_v16, %v291_v15 }
  0xb4   : > { %v370_v17 = vpop.f32.mrf.mxu2  ;;  %v288_v19 = vpop.f32.mrf.mxu0 }
  0xb5   : > { %v375_v21 = vadd.f32 %v370_v17, %v341_v18  ;;  %v292_v24 = vadd.f32 %v288_v19, %v254_v20 }
  0xb7   : > { %v338_v22 = vpop.f32.mrf.mxu1 }
  0xb8   : > { %v418_v23 = vpop.f32.mrf.mxu3  ;;  %v342_v28 = vadd.f32 %v338_v22, %v292_v24 }
  0xb9   : > { %v423_v26 = vadd.f32 %v418_v23, %v375_v21 }
  0xbc   : > { %v372_v25 = vpop.f32.mrf.mxu2  ;;  %v452_v27 = vpop.f32.mrf.mxu0 }
  0xbd   : > { %v457_v29 = vadd.f32 %v452_v27, %v423_v26  ;;  %v376_v30 = vadd.f32 %v372_v25, %v342_v28 }
  0xbf   : > { %v500_v31 = vpop.f32.mrf.mxu1 }
  0xc0   : > { %v420_v32 = vpop.f32.mrf.mxu3  ;;  %v505_v33 = vadd.f32 %v500_v31, %v457_v29 }
  0xc1   : > { %v424_v35 = vadd.f32 %v420_v32, %v376_v30 }
  0xc4   : > { %v534_v34 = vpop.f32.mrf.mxu2  ;;  %v454_v37 = vpop.f32.mrf.mxu0 }
  0xc5   : > { %v539_v36 = vadd.f32 %v534_v34, %v505_v33  ;;  %v458_v38 = vadd.f32 %v454_v37, %v424_v35 }
  0xc7   : > { %542 = vst.msk [vmem:[#allocation2] sm:$0xff] %vm541_vm10, %v539_v36  ;;  %v502_v39 = vpop.f32.mrf.mxu1 }
  0xc8   : > { %v506_v40 = vadd.f32 %v502_v39, %v458_v38 }
  0xcb   : > { %547 = sbr.rel (%p737_p2) target bundleno = 219 (0xdb), region = 44 }
  0xcc   : > { %v536_v41 = vpop.f32.mrf.mxu2 }
  0xcd   : > { %v540_v42 = vadd.f32 %v536_v41, %v506_v40 }
  0xcf   : > { %543 = vst.msk [vmem:[#allocation2 + $0x8] sm:$0xff] %vm541_vm10, %v540_v42 }
  0xd0   : > { %v843_v43 = vld [vmem:[%s1187_s2] ss:$0 sm:$0xff]  ;;  %vm564_vm11 = vcmask 519168  }
  0xd1   : > { %v844_v44 = vld [vmem:[%s1188_s3] ss:$0 sm:$0xff]  ;;  %v552_v45 = vmul.f32 %v843_v43, %v539_v36  ;;  %v553_v46 = vmul.f32 %v843_v43, %v540_v42 }
  0xd3   : > { %v558_v47 = vadd.f32 %v844_v44, %v552_v45  ;;  %v559_v48 = vadd.f32 %v844_v44, %v553_v46 }
  0xd5   : > { %v560_v49 = vmax.f32 %v558_v47, 0.0  ;;  %v561_v50 = vmax.f32 %v559_v48, 0.0 }
  0xd7   : > { %v562_v51 = vpack.c.bf16 %v560_v49, %v560_v49  ;;  %v563_v52 = vpack.c.bf16 %v561_v50, %v561_v50 }
  0xd9   : > { %565 = vst.msk [vmem:[%s1085_s27] sm:$0xf] %vm564_vm11, %v562_v51 }
  0xda   : > { %566 = vst.msk [vmem:[%s1085_s27 + $0x4] sm:$0xf] %vm564_vm11, %v563_v52 }
  0xdb PF: > { %s740_s18 = sshll.u32 %s939_s20, 4  ;;  %s582_s9 = sshll.u32 %s1085_s27, 4  ;;  %s583_s9 = int_to_ptr.vmem [resolvable:$true] %s582_s9 }
  0xdc   : > { %s579_s8 = sadd.s32 %s740_s18, %s710_s12  ;;  %s568_s26 = scalar_lea.sflag [#allocation4], %s229_s11 }
  0xdd   : > { %s741_s14 = sshll.u32 %s579_s8, 2  ;;  %s865_s27 = scalar_lea.hbm %s1189_s4, 128 }
  0xde   : > { %s581_s25 = scalar_lea.hbm %s1189_s4, %s741_s14 }
  0xdf   : > { %s584_s28 = sshll.u32 %s581_s25, 4  ;;  %s585_s28 = int_to_ptr.hbm [resolvable:$true] %s584_s28 }
  0xe0   : > { %s859_s6 = sshra.s32 %s585_s28, 4  ;;  %s860_s6 = int_to_ptr.hbm [resolvable:$true] %s859_s6 }
  0xe1   : > { %s861_s7 = scalar_lea.hbm %s860_s6, 8  ;;  %p866_p8 = scmp.lt.s32.totalorder %s860_s6, %s1189_s4 }
  0xe2   : > { %p862_p3 = scmp.ne.s32.totalorder %s860_s6, %s861_s7  ;;  %p867_p9 = scmp.lt.s32.totalorder %s865_s27, %s861_s7 }
  0xe4   : > { %p863_p4 = pnand %p862_p3, %p1048_p6  ;;  %p868_p10 = por %p867_p9, %p866_p8 }
  0xe6   : > { %p864_p5 = pneg %p863_p4 }
  0xe8   : > { %p869_p11 = pnand %p868_p10, %p864_p5 }
  0xea   : > { %872 = shalt.err (!%p869_p11)
}
  0xeb   : > { %s959_s11 = smov 64   ;;  %s960_s8 = smov 4  }
  0xec   : > { %752 = dma.vmem_to_hbm [thread:$0]  (%p1048_p6), %s583_s9, 128, %s585_s28, %s568_s26, %s959_s11, %s959_s11, %s960_s8  }
  0xed PF: > { %p758_p12 = scmp.ge.s32.totalorder %s955_s24, 2  ;;  %s599_s14 = sand.u32 1, %s919_s15  }
  0xee   : > { %s600_s29 = scalar_lea.sflag [#allocation4], %s599_s14 }
  0xef   : > { %p755_p13 = pnand %p758_p12, %p1055_p7 }
  0xf1   : > { %p756_p0 = pneg %p755_p13 }
  0xf3   : > { %914 = dma.done.wait (%p756_p0), %s600_s29, 128  }
  0xf4   : > { %916 = vsyncadd (%p756_p0), %s600_s29, 4294967168  ;;  %s17_s24 = sadd.s32 1, %s955_s24   ;;  %s1197_s30 = sld [smem:[#allocation6_spill]] }
  0xf5   : > { %p14_p1 = scmp.ge.s32.totalorder %s17_s24, 114   ;;  %s1198_s9 = sld [smem:[#allocation7_spill]] }
  0xf6   : > { %s1199_s13 = sld [smem:[#allocation8_spill]]  ;;  %s1200_s15 = smov %s923_s16 }
  0xf7   : > { %s1201_s16 = smov %s927_s17  ;;  %s1202_s17 = smov %s1069_s10 }
  0xf8   : > { %s1203_s18 = smov %s943_s21  ;;  %s1204_s19 = smov %s947_s22 }
  0xf9   : > { %s1205_s20 = smov %s951_s23  ;;  %16 = sbr.rel (!%p14_p1) target bundleno = 6 (0x6), region = 86 }
  0xfa   : > { %s1206_s21 = smov %s1197_s30 }
  0xfb   : > { %s1207_s22 = smov %s1198_s9 }
  0xfc   : > { %s1208_s23 = smov %s1199_s13 }
  0xfe   :  { %606 = vsyncpa [#allocation4], 1 }
  0xff   :  { %608 = vsyncpa [#allocation4 + $0x1], 1 }

</bundles_post_ra>
